<compile_context>
chip_gen: v6e
topology: v6e:2x2x1
jax: 0.10.0
libtpu: 0.0.40
codegen_flags: <defaults>
</compile_context>

<pallas_src>
import itertools

import jax
import jax.numpy as jnp
from jax.experimental import pallas as pl
from jax.experimental.pallas import tpu as pltpu


def _make_concat_kernel(offsets_and_sizes, cat_dim):
    """Kernel factory: copy each HBM shard straight into its slice of the HBM
    output via one async DMA per shard (no VMEM staging).

    Args:
      offsets_and_sizes: tuple of (offset, size) along `cat_dim`, one per shard
        (static Python ints -> zero-cost ref views).
      cat_dim: 0 (row concat) or 1 (column concat).
    """

    def kernel(*refs):
        *x_refs, o_ref, sems = refs
        copies = []
        # Issue all W DMAs before waiting on any of them so the DMA engines
        # can run the transfers concurrently.
        for w, (x_ref, (off, sz)) in enumerate(zip(x_refs, offsets_and_sizes)):
            if cat_dim == 1:
                dst = o_ref.at[:, off:off + sz]      # strided column panel
            else:
                dst = o_ref.at[off:off + sz, :]      # contiguous row block
            cp = pltpu.make_async_copy(x_ref, dst, sems.at[w])
            cp.start()
            copies.append(cp)
        for cp in copies:
            cp.wait()

    return kernel


def embeddings_all_to_one(tensors, cat_dim):
    """Pallas implementation of EmbeddingsAllToOne.forward.

    Args:
      tensors: list of world_size 2-D arrays.
        cat_dim=1 (pooled):   each [B, D_w] (D_w may differ) -> output [B, sum(D_w)].
        cat_dim=0 (sequence): each [B_w, D] (D equal)        -> output [sum(B_w), D].
      cat_dim: 0 or 1.

    Returns:
      Concatenation of `tensors` along `cat_dim`.
    """
    world_size = len(tensors)
    if world_size == 1:
        return tensors[0]

    dtype = tensors[0].dtype
    assert all(t.dtype == dtype for t in tensors), "all shards must share a dtype"
    assert all(t.ndim == 2 for t in tensors), "shards must be 2-D"

    if cat_dim == 1:
        B = tensors[0].shape[0]
        assert all(t.shape[0] == B for t in tensors), "pooled shards must share batch dim"
        sizes = [t.shape[1] for t in tensors]
        out_shape = jax.ShapeDtypeStruct((B, sum(sizes)), dtype)
    elif cat_dim == 0:
        D = tensors[0].shape[1]
        assert all(t.shape[1] == D for t in tensors), "sequence shards must share embedding dim"
        sizes = [t.shape[0] for t in tensors]
        out_shape = jax.ShapeDtypeStruct((sum(sizes), D), dtype)
    else:
        raise ValueError("cat_dim must be 0 or 1")

    offsets = list(itertools.accumulate([0] + sizes[:-1]))
    offsets_and_sizes = tuple(zip(offsets, sizes))

    kernel = _make_concat_kernel(offsets_and_sizes, cat_dim)

    return pl.pallas_call(
        kernel,
        out_shape=out_shape,
        in_specs=[pl.BlockSpec(memory_space=pl.ANY)] * world_size,
        out_specs=pl.BlockSpec(memory_space=pl.ANY),
        scratch_shapes=[pltpu.SemaphoreType.DMA((world_size,))],
        compiler_params=pltpu.CompilerParams(has_side_effects=True),
    )(*tensors)


if __name__ == "__main__":
    key = jax.random.PRNGKey(0)
    world_size = 4
    B, D = 8, 128  # small demo shapes

    keys = jax.random.split(key, world_size + 3)
    tensors = [
        jax.random.normal(keys[w], (B, D), dtype=jnp.float32)
        for w in range(world_size)
    ]

    # Pooled embeddings: cat_dim = 1 -> [B, W*D]
    pooled = jax.block_until_ready(embeddings_all_to_one(tensors, cat_dim=1))
    ref_pooled = jnp.concatenate(tensors, axis=1)
    assert pooled.shape == (B, world_size * D)
    assert jnp.array_equal(pooled, ref_pooled)

    # Sequence embeddings: cat_dim = 0 -> [W*B, D]
    seq = jax.block_until_ready(embeddings_all_to_one(tensors, cat_dim=0))
    ref_seq = jnp.concatenate(tensors, axis=0)
    assert seq.shape == (world_size * B, D)
    assert jnp.array_equal(seq, ref_seq)

    # Pooled with differing per-device embedding dims (torchrec allows this).
    ragged_dims = [128, 256, 128]
    ragged = [
        jax.random.normal(keys[world_size + i], (B, d), dtype=jnp.float32)
        for i, d in enumerate(ragged_dims)
    ]
    pooled_ragged = jax.block_until_ready(embeddings_all_to_one(ragged, cat_dim=1))
    assert jnp.array_equal(pooled_ragged, jnp.concatenate(ragged, axis=1))

    # Non-sublane-aligned batch (B not a multiple of 8) works: the DMA path has
    # no (8,128) BlockSpec tiling requirement.
    B2 = 12
    keys2 = jax.random.split(jax.random.PRNGKey(1), 2)
    tensors2 = [
        jax.random.normal(keys2[w], (B2, D), dtype=jnp.float32)
        for w in range(2)
    ]
    pooled2 = jax.block_until_ready(embeddings_all_to_one(tensors2, cat_dim=1))
    assert jnp.array_equal(pooled2, jnp.concatenate(tensors2, axis=1))
    seq2 = jax.block_until_ready(embeddings_all_to_one(tensors2, cat_dim=0))
    assert jnp.array_equal(seq2, jnp.concatenate(tensors2, axis=0))

    # world_size == 1 path (module returns the single tensor unchanged).
    single = jax.block_until_ready(embeddings_all_to_one([tensors[0]], cat_dim=1))
    assert jnp.array_equal(single, tensors[0])

    # TODO(synk): torch.device placement / set_device (and the optional .to(cpu)
    # move) are host-side concepts with no Pallas equivalent; JAX device
    # placement handles them outside the kernel.
    print("KERNEL_OK")
</pallas_src>

<mosaic_0001>
module attributes {stable_mosaic.version = 11 : i64} {
  func.func @kernel(%arg0: memref<8x128xf32, #tpu.memory_space<any>>, %arg1: memref<8x128xf32, #tpu.memory_space<any>>, %arg2: memref<8x128xf32, #tpu.memory_space<any>>, %arg3: memref<8x128xf32, #tpu.memory_space<any>>, %arg4: memref<8x512xf32, #tpu.memory_space<any>>, %arg5: memref<4x!tpu.dma_semaphore, #tpu.memory_space<semaphore_mem>>) attributes {dimension_semantics = [], scalar_prefetch = 0 : i64, scratch_operands = 1 : i64, tpu.core_type = #tpu.core_type<tc>} {
    %c0_i32 = arith.constant 0 : i32
    %c0_i32_0 = arith.constant 0 : i32
    %c0_i32_1 = arith.constant 0 : i32
    %0 = tpu.memref_slice %arg4[%c0_i32_0, %c0_i32_1] : memref<8x512xf32, #tpu.memory_space<any>> -> memref<8x128xf32, #tpu.memory_space<any>>
    %1 = tpu.memref_slice %arg5[%c0_i32] : memref<4x!tpu.dma_semaphore, #tpu.memory_space<semaphore_mem>> -> memref<1x!tpu.dma_semaphore, #tpu.memory_space<semaphore_mem>>
    %2 = tpu.memref_squeeze %1 : memref<1x!tpu.dma_semaphore, #tpu.memory_space<semaphore_mem>> -> memref<!tpu.dma_semaphore, #tpu.memory_space<semaphore_mem>>
    tpu.enqueue_dma source(%arg0 : memref<8x128xf32, #tpu.memory_space<any>>) target(%0 : memref<8x128xf32, #tpu.memory_space<any>>) target_semaphore(%2 : memref<!tpu.dma_semaphore, #tpu.memory_space<semaphore_mem>>)
    %c1_i32 = arith.constant 1 : i32
    %c0_i32_2 = arith.constant 0 : i32
    %c128_i32 = arith.constant 128 : i32
    %3 = tpu.memref_slice %arg4[%c0_i32_2, %c128_i32] : memref<8x512xf32, #tpu.memory_space<any>> -> memref<8x128xf32, #tpu.memory_space<any>>
    %4 = tpu.memref_slice %arg5[%c1_i32] : memref<4x!tpu.dma_semaphore, #tpu.memory_space<semaphore_mem>> -> memref<1x!tpu.dma_semaphore, #tpu.memory_space<semaphore_mem>>
    %5 = tpu.memref_squeeze %4 : memref<1x!tpu.dma_semaphore, #tpu.memory_space<semaphore_mem>> -> memref<!tpu.dma_semaphore, #tpu.memory_space<semaphore_mem>>
    tpu.enqueue_dma source(%arg1 : memref<8x128xf32, #tpu.memory_space<any>>) target(%3 : memref<8x128xf32, #tpu.memory_space<any>>) target_semaphore(%5 : memref<!tpu.dma_semaphore, #tpu.memory_space<semaphore_mem>>)
    %c2_i32 = arith.constant 2 : i32
    %c0_i32_3 = arith.constant 0 : i32
    %c256_i32 = arith.constant 256 : i32
    %6 = tpu.memref_slice %arg4[%c0_i32_3, %c256_i32] : memref<8x512xf32, #tpu.memory_space<any>> -> memref<8x128xf32, #tpu.memory_space<any>>
    %7 = tpu.memref_slice %arg5[%c2_i32] : memref<4x!tpu.dma_semaphore, #tpu.memory_space<semaphore_mem>> -> memref<1x!tpu.dma_semaphore, #tpu.memory_space<semaphore_mem>>
    %8 = tpu.memref_squeeze %7 : memref<1x!tpu.dma_semaphore, #tpu.memory_space<semaphore_mem>> -> memref<!tpu.dma_semaphore, #tpu.memory_space<semaphore_mem>>
    tpu.enqueue_dma source(%arg2 : memref<8x128xf32, #tpu.memory_space<any>>) target(%6 : memref<8x128xf32, #tpu.memory_space<any>>) target_semaphore(%8 : memref<!tpu.dma_semaphore, #tpu.memory_space<semaphore_mem>>)
    %c3_i32 = arith.constant 3 : i32
    %c0_i32_4 = arith.constant 0 : i32
    %c384_i32 = arith.constant 384 : i32
    %9 = tpu.memref_slice %arg4[%c0_i32_4, %c384_i32] : memref<8x512xf32, #tpu.memory_space<any>> -> memref<8x128xf32, #tpu.memory_space<any>>
    %10 = tpu.memref_slice %arg5[%c3_i32] : memref<4x!tpu.dma_semaphore, #tpu.memory_space<semaphore_mem>> -> memref<1x!tpu.dma_semaphore, #tpu.memory_space<semaphore_mem>>
    %11 = tpu.memref_squeeze %10 : memref<1x!tpu.dma_semaphore, #tpu.memory_space<semaphore_mem>> -> memref<!tpu.dma_semaphore, #tpu.memory_space<semaphore_mem>>
    tpu.enqueue_dma source(%arg3 : memref<8x128xf32, #tpu.memory_space<any>>) target(%9 : memref<8x128xf32, #tpu.memory_space<any>>) target_semaphore(%11 : memref<!tpu.dma_semaphore, #tpu.memory_space<semaphore_mem>>)
    %c0_i32_5 = arith.constant 0 : i32
    %c0_i32_6 = arith.constant 0 : i32
    %c0_i32_7 = arith.constant 0 : i32
    %12 = tpu.memref_slice %arg4[%c0_i32_6, %c0_i32_7] : memref<8x512xf32, #tpu.memory_space<any>> -> memref<8x128xf32, #tpu.memory_space<any>>
    %13 = tpu.memref_slice %arg5[%c0_i32_5] : memref<4x!tpu.dma_semaphore, #tpu.memory_space<semaphore_mem>> -> memref<1x!tpu.dma_semaphore, #tpu.memory_space<semaphore_mem>>
    %14 = tpu.memref_squeeze %13 : memref<1x!tpu.dma_semaphore, #tpu.memory_space<semaphore_mem>> -> memref<!tpu.dma_semaphore, #tpu.memory_space<semaphore_mem>>
    tpu.wait_dma2 semaphore(%14 : memref<!tpu.dma_semaphore, #tpu.memory_space<semaphore_mem>>) src(%arg0 : memref<8x128xf32, #tpu.memory_space<any>>) dst(%12 : memref<8x128xf32, #tpu.memory_space<any>>)
    %c1_i32_8 = arith.constant 1 : i32
    %c0_i32_9 = arith.constant 0 : i32
    %c128_i32_10 = arith.constant 128 : i32
    %15 = tpu.memref_slice %arg4[%c0_i32_9, %c128_i32_10] : memref<8x512xf32, #tpu.memory_space<any>> -> memref<8x128xf32, #tpu.memory_space<any>>
    %16 = tpu.memref_slice %arg5[%c1_i32_8] : memref<4x!tpu.dma_semaphore, #tpu.memory_space<semaphore_mem>> -> memref<1x!tpu.dma_semaphore, #tpu.memory_space<semaphore_mem>>
    %17 = tpu.memref_squeeze %16 : memref<1x!tpu.dma_semaphore, #tpu.memory_space<semaphore_mem>> -> memref<!tpu.dma_semaphore, #tpu.memory_space<semaphore_mem>>
    tpu.wait_dma2 semaphore(%17 : memref<!tpu.dma_semaphore, #tpu.memory_space<semaphore_mem>>) src(%arg1 : memref<8x128xf32, #tpu.memory_space<any>>) dst(%15 : memref<8x128xf32, #tpu.memory_space<any>>)
    %c2_i32_11 = arith.constant 2 : i32
    %c0_i32_12 = arith.constant 0 : i32
    %c256_i32_13 = arith.constant 256 : i32
    %18 = tpu.memref_slice %arg4[%c0_i32_12, %c256_i32_13] : memref<8x512xf32, #tpu.memory_space<any>> -> memref<8x128xf32, #tpu.memory_space<any>>
    %19 = tpu.memref_slice %arg5[%c2_i32_11] : memref<4x!tpu.dma_semaphore, #tpu.memory_space<semaphore_mem>> -> memref<1x!tpu.dma_semaphore, #tpu.memory_space<semaphore_mem>>
    %20 = tpu.memref_squeeze %19 : memref<1x!tpu.dma_semaphore, #tpu.memory_space<semaphore_mem>> -> memref<!tpu.dma_semaphore, #tpu.memory_space<semaphore_mem>>
    tpu.wait_dma2 semaphore(%20 : memref<!tpu.dma_semaphore, #tpu.memory_space<semaphore_mem>>) src(%arg2 : memref<8x128xf32, #tpu.memory_space<any>>) dst(%18 : memref<8x128xf32, #tpu.memory_space<any>>)
    %c3_i32_14 = arith.constant 3 : i32
    %c0_i32_15 = arith.constant 0 : i32
    %c384_i32_16 = arith.constant 384 : i32
    %21 = tpu.memref_slice %arg4[%c0_i32_15, %c384_i32_16] : memref<8x512xf32, #tpu.memory_space<any>> -> memref<8x128xf32, #tpu.memory_space<any>>
    %22 = tpu.memref_slice %arg5[%c3_i32_14] : memref<4x!tpu.dma_semaphore, #tpu.memory_space<semaphore_mem>> -> memref<1x!tpu.dma_semaphore, #tpu.memory_space<semaphore_mem>>
    %23 = tpu.memref_squeeze %22 : memref<1x!tpu.dma_semaphore, #tpu.memory_space<semaphore_mem>> -> memref<!tpu.dma_semaphore, #tpu.memory_space<semaphore_mem>>
    tpu.wait_dma2 semaphore(%23 : memref<!tpu.dma_semaphore, #tpu.memory_space<semaphore_mem>>) src(%arg3 : memref<8x128xf32, #tpu.memory_space<any>>) dst(%21 : memref<8x128xf32, #tpu.memory_space<any>>)
    return
  }
}

</mosaic_0001>

<bundles_post_ra>
// kernel: tpu_custom_call.1
= control target key start
LH: loop header
LB: loop body
LE: loop exit
PB: predicated region body
PF: predicated region fallthrough
CT: control target
= control target key end

     0   :  { %s98_s18 = smov [#allocation2]   ;;  %s99_s19 = smov 131072   ;;  %s153_s0 = inlined_call_operand.hbm [shape: f32[8,128], index: 0, kind: input, shape index: {}]   ;;  %s154_s4 = inlined_call_operand.hbm [shape: f32[8,512], index: 4, kind: output, shape index: {}]   ;;  %s155_s1 = inlined_call_operand.hbm [shape: f32[8,128], index: 1, kind: input, shape index: {}]   ;;  %s156_s2 = inlined_call_operand.hbm [shape: f32[8,128], index: 2, kind: input, shape index: {}]   ;;  %s157_s3 = inlined_call_operand.hbm [shape: f32[8,128], index: 3, kind: input, shape index: {}]  }
   0x1   :  { %s16_s17 = scalar_lea.hbm %s154_s4, 128  ;;  %s100_s20 = smov 0  }
   0x2   :  { %15 = dma.general %s153_s0, 128, %s154_s4, %s98_s18, %s99_s19, [#allocation4], %s100_s20, 0  }
   0x3   :  { %s25_s27 = scalar_lea.hbm %s154_s4, 256  ;;  %s101_s28 = smov [#allocation2 + $0x1]  }
   0x4   :  { %24 = dma.general %s155_s1, 128, %s16_s17, %s101_s28, %s99_s19, [#allocation6], %s100_s20, 0  }
   0x5   :  { %s34_s7 = scalar_lea.hbm %s154_s4, 384  ;;  %s102_s8 = smov [#allocation2 + $0x2]  }
   0x6   :  { %33 = dma.general %s156_s2, 128, %s25_s27, %s102_s8, %s99_s19, [#allocation8], %s100_s20, 0  }
   0x7   :  { %s103_s11 = smov [#allocation2 + $0x3]  }
   0x8   :  { %42 = dma.general %s157_s3, 128, %s34_s7, %s103_s11, %s99_s19, [#allocation10], %s100_s20, 0  }
   0x9   :  { %90 = dma.done.wait [#allocation2], 128 }
   0xa   :  { %91 = vsyncadd [#allocation2], 4294967168 }
   0xb   :  { %92 = dma.done.wait [#allocation2 + $0x1], 128 }
   0xc   :  { %93 = vsyncadd [#allocation2 + $0x1], 4294967168 }
   0xd   :  { %94 = dma.done.wait [#allocation2 + $0x2], 128 }
   0xe   :  { %95 = vsyncadd [#allocation2 + $0x2], 4294967168 }
   0xf   :  { %96 = dma.done.wait [#allocation2 + $0x3], 128 }
  0x10   :  { %97 = vsyncadd [#allocation2 + $0x3], 4294967168 }
  0x11   :  { %53 = vsyncmov [#allocation2] }
  0x14   :  { %s54_s1 = vpop.sfrf %53 }
  0x15   :  { %p80_p0 = scmp.ne.s32.totalorder %s54_s1, 0 }
  0x17   :  { %58 = shalt.err (%p80_p0)  }
  0x18   :  { %60 = vsyncmov [#allocation2 + $0x1] }
  0x1b   :  { %s61_s4 = vpop.sfrf %60 }
  0x1c   :  { %p81_p1 = scmp.ne.s32.totalorder %s61_s4, 0 }
  0x1e   :  { %65 = shalt.err (%p81_p1)  }
  0x1f   :  { %67 = vsyncmov [#allocation2 + $0x2] }
  0x22   :  { %s68_s2 = vpop.sfrf %67 }
  0x23   :  { %p82_p2 = scmp.ne.s32.totalorder %s68_s2, 0 }
  0x25   :  { %72 = shalt.err (%p82_p2)  }
  0x26   :  { %74 = vsyncmov [#allocation2 + $0x3] }
  0x29   :  { %s75_s3 = vpop.sfrf %74 }
  0x2a   :  { %p83_p3 = scmp.ne.s32.totalorder %s75_s3, 0 }
  0x2c   :  { %79 = shalt.err (%p83_p3)  }

</bundles_post_ra>
